<compile_context>
chip_gen: v7x
topology: tpu7x:2x2x1
jax: 0.10.0
libtpu: 0.0.40
codegen_flags: <defaults>
</compile_context>

<pallas_src>
import functools

import jax
import jax.numpy as jnp
from jax import lax
from jax.experimental import pallas as pl
from jax.experimental.pallas import tpu as pltpu


def _ntxent_lse_kernel(xc_ref, xr_ref, o_ref, m_ref, l_ref, *,
                       n_valid: int, padded: bool):
    """Flash-style online log-sum-exp over the off-diagonal similarity logits.

    Logits are computed transposed, shape (TC, TR), so per-row statistics live
    in the lane dimension: m_ref / l_ref / the output are (1, TR) lane-dense.
    """
    i = pl.program_id(0)                 # row tile (parallel)
    j = pl.program_id(1)                 # column tile (reduction, innermost)
    n_j = pl.num_programs(1)
    tc, _ = xc_ref.shape
    tr, _ = xr_ref.shape

    @pl.when(j == 0)
    def _init():
        m_ref[...] = jnp.full_like(m_ref, -1e30)
        l_ref[...] = jnp.zeros_like(l_ref)

    # (TC, TR) logits: contract the last dim of BOTH operands (no transpose),
    # bf16 operands on the MXU, f32 accumulation.  Temperature is already folded
    # into the row operand in the wrapper.
    s = lax.dot_general(xc_ref[...], xr_ref[...],
                        dimension_numbers=(((1,), (1,)), ((), ())),
                        preferred_element_type=jnp.float32)

    # Mask the self-pair (and any zero-padded columns) inside this tile.
    c_loc = lax.broadcasted_iota(jnp.int32, s.shape, 0)      # local column index
    r_loc = lax.broadcasted_iota(jnp.int32, s.shape, 1)      # local row index
    invalid = (c_loc - r_loc) == (i * tr - j * tc)           # global col == global row
    if padded:
        invalid = jnp.logical_or(invalid, c_loc >= n_valid - j * tc)
    s = jnp.where(invalid, -1e30, s)

    # Online log-sum-exp update (per original row -> lane dimension).
    m_old = m_ref[...]
    m_new = jnp.maximum(m_old, jnp.max(s, axis=0, keepdims=True))     # (1, TR)
    # TODO(synk): on v6e/v7x a bf16 EUP path for this exp could halve push volume
    #             once profiling shows the EUP slot is binding.
    l_ref[...] = (l_ref[...] * jnp.exp(m_old - m_new)
                  + jnp.sum(jnp.exp(s - m_new), axis=0, keepdims=True))
    m_ref[...] = m_new

    @pl.when(j == n_j - 1)
    def _fini():
        # (1, TR) -> (1, 1, TR): leading unit dim only, no data movement.
        o_ref[...] = (m_ref[...] + jnp.log(l_ref[...])).reshape(o_ref.shape)


def _round_up(x, m):
    return ((x + m - 1) // m) * m


def _vmem_block_bytes(tr, tc, d):
    # double-buffered bf16 input blocks + f32 logits/exp temporaries + output
    return 2 * 2 * (tr + tc) * d + 3 * tr * tc * 4 + 2 * tr * 4


def _select_tiles(n, d):
    """VMEM-aware tile selection. Returns (tr, tc, n_pad, vmem_limit_bytes)."""
    try:
        cap = int(pltpu.get_tpu_info().vmem_capacity_bytes)
    except Exception:
        cap = 64 * 1024 * 1024                      # conservative: v7x per-TC VMEM
    vmem_limit = min((cap * 3) // 4, 96 * 1024 * 1024)   # <=48 MiB on 64-MiB parts
    budget = vmem_limit // 2                        # headroom for compiler scratch

    # Single-tile fast path: one grid step, no padding work in the hot loop.
    n16 = _round_up(n, 16)
    if n16 <= 1024 and _vmem_block_bytes(n16, n16, d) <= budget:
        return n16, n16, n16, vmem_limit

    # General path: MXU-aligned power-of-two tiles; bigger row tiles on 128-MiB
    # VMEM parts (v5e/v6e) to halve the number of passes over the column stream.
    tr, tc = (512, 512) if cap >= 96 * 1024 * 1024 else (256, 512)
    while _vmem_block_bytes(tr, tc, d) > budget and tc > 256:
        tc //= 2
    while _vmem_block_bytes(tr, tc, d) > budget and tr > 128:
        tr //= 2
    n_pad = _round_up(n, max(tr, tc))               # both tiles divide n_pad
    return tr, tc, n_pad, vmem_limit


def contrastive_loss(view_1, view_2, *, temperature: float):
    """Pallas TPU implementation of ContrastiveLoss.forward (num_views=2)."""
    bs, d = view_1.shape
    assert view_2.shape == (bs, d)
    n = 2 * bs
    inv_temp = 1.0 / float(temperature)

    # ---- O(N*D) prep in the wrapper: normalize once, positive logits (exact) ----
    x = jnp.concatenate([view_1.astype(jnp.float32),
                         view_2.astype(jnp.float32)], axis=0)
    # F.normalize(x, dim=1): x / max(||x||, 1e-12) == x * rsqrt(max(||x||^2, 1e-24))
    xn = x * lax.rsqrt(jnp.maximum(jnp.sum(x * x, axis=1, keepdims=True), 1e-24))
    # positive partner of row r is row (r + bs) mod n
    pos = jnp.sum(xn * jnp.roll(xn, bs, axis=0), axis=1) * inv_temp        # (n,)

    tr, tc, n_pad, vmem_limit = _select_tiles(n, d)
    xn_p = jnp.pad(xn, ((0, n_pad - n), (0, 0))) if n_pad > n else xn
    xc = xn_p.astype(jnp.bfloat16)                       # column operand (bf16 HBM)
    xr = (xn_p * inv_temp).astype(jnp.bfloat16)          # row operand, temp folded

    n_rt, n_ct = n_pad // tr, n_pad // tc
    kernel = functools.partial(_ntxent_lse_kernel,
                               n_valid=n, padded=(n_pad > n))

    lse = pl.pallas_call(
        kernel,
        out_shape=jax.ShapeDtypeStruct((n_rt, 1, tr), jnp.float32),
        grid_spec=pltpu.PrefetchScalarGridSpec(
            num_scalar_prefetch=0,
            grid=(n_rt, n_ct),
            in_specs=[
                # columns stream along j; the row block stays resident across j.
                # TODO(synk): pipeline_mode=pl.Buffered(3) on the column spec can
                #             add DMA slack on v5e if profiling shows exposure.
                pl.BlockSpec((tc, d), lambda i, j: (j, 0)),
                pl.BlockSpec((tr, d), lambda i, j: (i, 0)),
            ],
            out_specs=pl.BlockSpec((1, 1, tr), lambda i, j: (i, 0, 0)),
            scratch_shapes=[
                pltpu.VMEM((1, tr), jnp.float32),   # running max (online LSE)
                pltpu.VMEM((1, tr), jnp.float32),   # running sum of exp
            ],
        ),
        compiler_params=pltpu.CompilerParams(
            dimension_semantics=("parallel", "arbitrary"),
            vmem_limit_bytes=vmem_limit,
        ),
    )(xc, xr)

    lse_rows = lse.reshape(n_pad)[:n]
    # CrossEntropyLoss(mean) with the positive in class 0:  mean(lse_offdiag - pos)
    return jnp.mean(lse_rows - pos)


def _reference_loss(view_1, view_2, temperature):
    """Pure-JAX f32 reference mirroring the PyTorch module exactly."""
    bs = view_1.shape[0]
    dim = 2 * bs
    x = jnp.concatenate([view_1, view_2], axis=0)
    x = x / jnp.maximum(jnp.linalg.norm(x, axis=1, keepdims=True), 1e-12)
    sim = (x @ x.T) / temperature
    idx = jnp.arange(dim)
    diag = idx[:, None] == idx[None, :]
    pos_mask = idx[None, :] == ((idx[:, None] + bs) % dim)
    sim_off = jnp.where(diag, -jnp.inf, sim)
    lse = jax.nn.logsumexp(sim_off, axis=1)
    pos = jnp.sum(jnp.where(pos_mask, sim, 0.0), axis=1)
    return jnp.mean(lse - pos)


if __name__ == "__main__":
    config = {"temperature": 0.5}   # deterministic in-script "parameters"
    bs, d = 8, 32                   # two augmented views of shape (bs, D)

    key = jax.random.PRNGKey(0)
    k1, k2 = jax.random.split(key)
    view_1 = jax.random.normal(k1, (bs, d), dtype=jnp.float32)
    view_2 = jax.random.normal(k2, (bs, d), dtype=jnp.float32)

    loss = contrastive_loss(view_1, view_2, temperature=config["temperature"])
    loss = jax.block_until_ready(loss)

    ref = _reference_loss(view_1, view_2, config["temperature"])
    # bf16 MXU operands (f32 accumulation): tolerance loosened vs the f32 reference.
    assert jnp.allclose(loss, ref, atol=3e-2, rtol=3e-2), (loss, ref)

    print("KERNEL_OK")
</pallas_src>

<mosaic_0001>
module attributes {stable_mosaic.version = 11 : i64} {
  func.func @_ntxent_lse_kernel(%arg0: i32, %arg1: i32, %arg2: memref<16x32xbf16, #tpu.memory_space<vmem>>, %arg3: memref<16x32xbf16, #tpu.memory_space<vmem>>, %arg4: memref<1x1x16xf32, #tpu.memory_space<vmem>>, %arg5: memref<1x16xf32, #tpu.memory_space<vmem>>, %arg6: memref<1x16xf32, #tpu.memory_space<vmem>>) attributes {dimension_semantics = [#tpu.dimension_semantics<parallel>, #tpu.dimension_semantics<arbitrary>], iteration_bounds = array<i64: 1, 1>, scalar_prefetch = 0 : i64, scratch_operands = 2 : i64, tpu.core_type = #tpu.core_type<tc>, window_params = [{transform_indices = @transform_0, window_bounds = array<i64: 16, 32>}, {transform_indices = @transform_1, window_bounds = array<i64: 16, 32>}, {transform_indices = @transform_2, window_bounds = array<i64: 1, 1, 16>}]} {
    %c0_i32 = arith.constant 0 : i32
    %0 = arith.cmpi eq, %arg1, %c0_i32 : i32
    %1 = arith.extui %0 : i1 to i32
    %c0_i32_0 = arith.constant 0 : i32
    %2 = arith.cmpi ne, %1, %c0_i32_0 : i32
    scf.if %2 {
      %cst_18 = arith.constant -1.000000e+30 : f32
      %35 = vector.broadcast %cst_18 : f32 to vector<1x16xf32>
      %c0_19 = arith.constant 0 : index
      %c0_20 = arith.constant 0 : index
      %36 = vector.load %arg5[%c0_19, %c0_20] : memref<1x16xf32, #tpu.memory_space<vmem>>, vector<1x16xf32>
      tpu.vector_store %arg5[%c0_19, %c0_20], %35 {strides = array<i32>} : memref<1x16xf32, #tpu.memory_space<vmem>>, vector<1x16xf32>,
      %cst_21 = arith.constant 0.000000e+00 : f32
      %37 = vector.broadcast %cst_21 : f32 to vector<1x16xf32>
      %c0_22 = arith.constant 0 : index
      %c0_23 = arith.constant 0 : index
      %38 = vector.load %arg6[%c0_22, %c0_23] : memref<1x16xf32, #tpu.memory_space<vmem>>, vector<1x16xf32>
      tpu.vector_store %arg6[%c0_22, %c0_23], %37 {strides = array<i32>} : memref<1x16xf32, #tpu.memory_space<vmem>>, vector<1x16xf32>,
    } else {
    }
    %c0 = arith.constant 0 : index
    %c0_1 = arith.constant 0 : index
    %3 = vector.load %arg2[%c0, %c0_1] : memref<16x32xbf16, #tpu.memory_space<vmem>>, vector<16x32xbf16>
    %c0_2 = arith.constant 0 : index
    %c0_3 = arith.constant 0 : index
    %4 = vector.load %arg3[%c0_2, %c0_3] : memref<16x32xbf16, #tpu.memory_space<vmem>>, vector<16x32xbf16>
    %cst = arith.constant dense<0.000000e+00> : vector<16x16xf32>
    %5 = tpu.matmul %3, %4, %cst {dimension_numbers = #tpu.dot_dimension_numbers<[1], [1], [0], [0], [0, 0, 1, 0], [], []>} : vector<16x32xbf16>, vector<16x32xbf16>, vector<16x16xf32> -> vector<16x16xf32>
    %6 = tpu.iota {dimensions = array<i32: 0>} : vector<16x16xi32>
    %7 = tpu.iota {dimensions = array<i32: 1>} : vector<16x16xi32>
    %8 = arith.subi %6, %7 : vector<16x16xi32>
    %c16_i32 = arith.constant 16 : i32
    %9 = arith.muli %arg0, %c16_i32 : i32
    %c16_i32_4 = arith.constant 16 : i32
    %10 = arith.muli %arg1, %c16_i32_4 : i32
    %11 = arith.subi %9, %10 : i32
    %12 = vector.broadcast %11 : i32 to vector<16x16xi32>
    %13 = arith.cmpi eq, %8, %12 : vector<16x16xi32>
    %cst_5 = arith.constant -1.000000e+30 : f32
    %14 = vector.broadcast %cst_5 : f32 to vector<16x16xf32>
    %15 = arith.select %13, %14, %5 : vector<16x16xi1>, vector<16x16xf32>
    %c0_6 = arith.constant 0 : index
    %c0_7 = arith.constant 0 : index
    %16 = vector.load %arg5[%c0_6, %c0_7] : memref<1x16xf32, #tpu.memory_space<vmem>>, vector<1x16xf32>
    %cst_8 = arith.constant dense<0xFF800000> : vector<16xf32>
    %17 = vector.multi_reduction <maximumf>, %15, %cst_8 [0] : vector<16x16xf32> to vector<16xf32>
    %18 = vector.shape_cast %17 : vector<16xf32> to vector<1x16xf32>
    %19 = arith.maximumf %16, %18 : vector<1x16xf32>
    %c0_9 = arith.constant 0 : index
    %c0_10 = arith.constant 0 : index
    %20 = vector.load %arg6[%c0_9, %c0_10] : memref<1x16xf32, #tpu.memory_space<vmem>>, vector<1x16xf32>
    %21 = arith.subf %16, %19 : vector<1x16xf32>
    %22 = math.exp %21 : vector<1x16xf32>
    %23 = arith.mulf %20, %22 : vector<1x16xf32>
    %24 = vector.broadcast %19 : vector<1x16xf32> to vector<16x16xf32>
    %25 = arith.subf %15, %24 : vector<16x16xf32>
    %26 = math.exp %25 : vector<16x16xf32>
    %cst_11 = arith.constant dense<0.000000e+00> : vector<16xf32>
    %27 = vector.multi_reduction <add>, %26, %cst_11 [0] : vector<16x16xf32> to vector<16xf32>
    %28 = vector.shape_cast %27 : vector<16xf32> to vector<1x16xf32>
    %29 = arith.addf %23, %28 : vector<1x16xf32>
    %c0_12 = arith.constant 0 : index
    %c0_13 = arith.constant 0 : index
    %30 = vector.load %arg6[%c0_12, %c0_13] : memref<1x16xf32, #tpu.memory_space<vmem>>, vector<1x16xf32>
    tpu.vector_store %arg6[%c0_12, %c0_13], %29 {strides = array<i32>} : memref<1x16xf32, #tpu.memory_space<vmem>>, vector<1x16xf32>,
    %c0_14 = arith.constant 0 : index
    %c0_15 = arith.constant 0 : index
    %31 = vector.load %arg5[%c0_14, %c0_15] : memref<1x16xf32, #tpu.memory_space<vmem>>, vector<1x16xf32>
    tpu.vector_store %arg5[%c0_14, %c0_15], %19 {strides = array<i32>} : memref<1x16xf32, #tpu.memory_space<vmem>>, vector<1x16xf32>,
    %c0_i32_16 = arith.constant 0 : i32
    %32 = arith.cmpi eq, %arg1, %c0_i32_16 : i32
    %33 = arith.extui %32 : i1 to i32
    %c0_i32_17 = arith.constant 0 : i32
    %34 = arith.cmpi ne, %33, %c0_i32_17 : i32
    scf.if %34 {
      %c0_18 = arith.constant 0 : index
      %c0_19 = arith.constant 0 : index
      %35 = vector.load %arg5[%c0_18, %c0_19] : memref<1x16xf32, #tpu.memory_space<vmem>>, vector<1x16xf32>
      %c0_20 = arith.constant 0 : index
      %c0_21 = arith.constant 0 : index
      %36 = vector.load %arg6[%c0_20, %c0_21] : memref<1x16xf32, #tpu.memory_space<vmem>>, vector<1x16xf32>
      %37 = math.log %36 : vector<1x16xf32>
      %38 = arith.addf %35, %37 : vector<1x16xf32>
      %39 = vector.shape_cast %38 : vector<1x16xf32> to vector<1x1x16xf32>
      %c0_22 = arith.constant 0 : index
      %c0_23 = arith.constant 0 : index
      %c0_24 = arith.constant 0 : index
      %40 = vector.load %arg4[%c0_22, %c0_23, %c0_24] : memref<1x1x16xf32, #tpu.memory_space<vmem>>, vector<1x1x16xf32>
      tpu.vector_store %arg4[%c0_22, %c0_23, %c0_24], %39 {strides = array<i32>} : memref<1x1x16xf32, #tpu.memory_space<vmem>>, vector<1x1x16xf32>,
    } else {
    }
    return
  }
  func.func @transform_0(%arg0: i32, %arg1: i32) -> (i32, i32) {
    %c0_i32 = arith.constant 0 : i32
    %c0_i32_0 = arith.constant 0 : i32
    return %arg1, %c0_i32 : i32, i32
  }
  func.func @transform_1(%arg0: i32, %arg1: i32) -> (i32, i32) {
    %c0_i32 = arith.constant 0 : i32
    %c0_i32_0 = arith.constant 0 : i32
    return %arg0, %c0_i32 : i32, i32
  }
  func.func @transform_2(%arg0: i32, %arg1: i32) -> (i32, i32, i32) {
    %c0_i32 = arith.constant 0 : i32
    %c0_i32_0 = arith.constant 0 : i32
    %c0_i32_1 = arith.constant 0 : i32
    return %arg0, %c0_i32, %c0_i32_0 : i32, i32, i32
  }
}

</mosaic_0001>

<bundles_post_ra>
// kernel: tpu_custom_call.1
= control target key start
LH: loop header
LB: loop body
LE: loop exit
PB: predicated region body
PF: predicated region fallthrough
CT: control target
= control target key end

     0   :  { %7 = vsyncpa [#allocation5], 0  ;;  %s361_s0 = inlined_call_operand.hbm [shape: bf16[16,32], index: 0, kind: input, shape index: {}]   ;;  %s362_s1 = inlined_call_operand.hbm [shape: bf16[16,32], index: 1, kind: input, shape index: {}]   ;;  %s363_s2 = inlined_call_operand.hbm [shape: f32[1,1,16], index: 2, kind: output, shape index: {}]  }
   0x1   :  { %8 = vsyncpa [#allocation8], 0 }
   0x2   :  { %9 = vsyncpa [#allocation6], 0  ;;  %s293_s9 = smov [#allocation4]   ;;  %s221_s13 = scalar_lea.hbm %s361_s0, 128 }
   0x3   :  { %s15_s10 = sshll.u32 %s293_s9, 4  ;;  %p222_p0 = scmp.ne.s32.totalorder %s361_s0, %s221_s13  ;;  %s16_s10 = int_to_ptr.vmem [resolvable:$true] %s15_s10 }
   0x4   :  { %p225_p1 = scmp.lt.u32.totalorder %s221_s13, %s361_s0 }
   0x6   :  { %p227_p2 = pnand %p225_p1, %p222_p0 }
   0x8   :  { %230 = shalt.err (!%p227_p2)
}
   0x9   :  { %s231_s18 = scalar_lea.vmem %s16_s10, 128  ;;  %p236_p4 = scmp.lt.s32.totalorder %s16_s10, %s16_s10 }
   0xa   :  { %p232_p3 = scmp.ne.s32.totalorder %s16_s10, %s231_s18  ;;  %p237_p5 = scmp.lt.s32.totalorder %s231_s18, %s231_s18 }
   0xc   :  { %p238_p6 = por %p237_p5, %p236_p4 }
   0xe   :  { %p239_p7 = pnand %p238_p6, %p232_p3 }
  0x10   :  { %242 = shalt.err (!%p239_p7)
}
  0x11   :  { %s294_s19 = smov 64   ;;  %s295_s20 = smov 4  }
  0x12   :  { %21 = dma.hbm_to_vmem [thread:$0]  %s361_s0, 128, %s16_s10, [#allocation5], %s294_s19, %s294_s19, %s295_s20  }
  0x13   :  { %s296_s23 = smov [#allocation7]   ;;  %s243_s27 = scalar_lea.hbm %s362_s1, 128 }
  0x14   :  { %s27_s24 = sshll.u32 %s296_s23, 4  ;;  %p244_p8 = scmp.ne.s32.totalorder %s362_s1, %s243_s27  ;;  %s28_s24 = int_to_ptr.vmem [resolvable:$true] %s27_s24 }
  0x15   :  { %p247_p9 = scmp.lt.u32.totalorder %s243_s27, %s362_s1 }
  0x17   :  { %p249_p10 = pnand %p247_p9, %p244_p8 }
  0x19   :  { %252 = shalt.err (!%p249_p10)
}
  0x1a   :  { %s253_s4 = scalar_lea.vmem %s28_s24, 128  ;;  %p258_p12 = scmp.lt.s32.totalorder %s28_s24, %s28_s24 }
  0x1b   :  { %p254_p11 = scmp.ne.s32.totalorder %s28_s24, %s253_s4  ;;  %p259_p13 = scmp.lt.s32.totalorder %s253_s4, %s253_s4 }
  0x1d   :  { %p260_p0 = por %p259_p13, %p258_p12 }
  0x1f   :  { %p261_p1 = pnand %p260_p0, %p254_p11 }
  0x21   :  { %264 = shalt.err (!%p261_p1)
}
  0x22   :  { %33 = dma.hbm_to_vmem [thread:$0]  %s362_s1, 128, %s28_s24, [#allocation8], %s294_s19, %s294_s19, %s295_s20  }
  0x23   :  { %287 = dma.done.wait [#allocation5], 128  }
  0x24   :  { %288 = vsyncadd [#allocation5], 4294967168 }
  0x25   :  { %289 = dma.done.wait [#allocation8], 128  }
  0x26   :  { %290 = vsyncadd [#allocation8], 4294967168  ;;  %vm45_vm0 = vcmask 122880   ;;  %v297_v0 = vmov -1e+30   ;;  %v298_v1 = vmov 0.0   ;;  %v110_v5 = vlaneseq }
  0x27   :  { %46 = vst.msk [vmem:[#allocation2] sm:$0x1] %vm45_vm0, %v297_v0  ;;  %47 = vst.msk [vmem:[#allocation3] sm:$0x1] %vm45_vm0, %v298_v1  ;;  %197 = vmatprep.subr.bf16.mxu0 %v298_v1  ;;  %vm299_vm1 = vmmov 0   ;;  %vm62_vm2 = vcmask 261120  }
  0x28   :  { %199 = vmatprep.mubr.msk.bf16.mxu0 %vm299_vm1, %v298_v1  ;;  %v211_v2 = vld [vmem:[#allocation7] sm:$0xff]   ;;  %v212_v4 = vld [vmem:[#allocation4] sm:$0xff]   ;;  %v111_v6 = vshrl.u32 %v110_v5, 7  ;;  %v114_v7 = vand.u32 127, %v110_v5  ;;  %vm126_vm5 = vcmask 130048   ;;  %s300_s1 = smov [#allocation9]  }
  0x29   :  { %v67_v3 = vsel %vm62_vm2, %v211_v2, 0  ;;  %s182_s6 = sshll.u32 %s300_s1, 4  ;;  %s183_s6 = int_to_ptr.vmem [resolvable:$true] %s182_s6 }
  0x2a   :  { %198 = vmatpush3.bf16.xpose.msra.mxu0 %v67_v3  ;;  %v112_v8 = vadd.s32 8, %v111_v6  ;;  %v115_v9 = vsub.s32 %v111_v6, %v114_v7  ;;  %v145_v27 = vsub.s32 0, %v111_v6  ;;  %s265_s7 = scalar_lea.vmem %s183_s6, 16  ;;  %s269_s8 = scalar_lea.vmem %s183_s6, 32 }
  0x2b   :  { %p266_p2 = scmp.ne.s32.totalorder %s183_s6, %s265_s7  ;;  %p270_p3 = scmp.lt.s32.totalorder %s183_s6, %s183_s6 }
  0x2c   :  { %v116_v10 = vsub.s32 %v112_v8, %v114_v7  ;;  %vm121_vm3 = vcmp.eq.s32.totalorder %v115_v9, 0  ;;  %p271_p4 = scmp.lt.s32.totalorder %s269_s8, %s265_s7 }
  0x2e   :  { %vm122_vm4 = vcmp.eq.s32.totalorder %v116_v10, 0  ;;  %v125_v25 = vld [vmem:[#allocation2] sm:$0x1]  ;;  %v137_v46 = vld [vmem:[#allocation3] sm:$0x1]  ;;  %p272_p5 = por %p271_p4, %p270_p3 }
  0x30   :  { %p273_p6 = pnand %p272_p5, %p266_p2 }
  0x31   :  { %200 = vmatmul.mubr.msk.bf16.vlgmr.msra.gmra.mrb[0].mxu0 %vm62_vm2, %v212_v4 }
 0x104   :  { %v103_v11 = vpop.f32.mrb[0].mxu0 }
 0x105   :  { %v123_v12 = vsel %vm121_vm3, -1e+30, %v103_v11  ;;  %v201_v13 = vpop.f32.mrb[1].mxu0 }
 0x106   :  { %v106_v14 = vpop.f32.mrb[2].mxu0  ;;  %v127_v17 = vsel %vm126_vm5, %v123_v12, -inf }
 0x107   :  { %v124_v15 = vsel %vm122_vm4, -1e+30, %v106_v14  ;;  %v202_v16 = vpop.f32.mrb[3].mxu0 }
 0x108   :  { %v128_v18 = vsel %vm126_vm5, %v124_v15, -inf }
 0x109   :  { %v129_v19 = vmax.f32 %v127_v17, %v128_v18 }
 0x10b   :  { %v130_v20 = vrot.slane %v129_v19, 4 }
 0x10d   :  { %v131_v21 = vmax.f32 %v129_v19, %v130_v20 }
 0x10f   :  { %v132_v22 = vrot.slane %v131_v21, 2 }
 0x111   :  { %v133_v23 = vmax.f32 %v131_v21, %v132_v22 }
 0x113   :  { %v134_v24 = vrot.slane %v133_v23, 1 }
 0x115   :  { %v135_v26 = vmax.f32 %v133_v23, %v134_v24 }
 0x117   :  { %v136_v28 = vmax.f32 %v125_v25, %v135_v26 }
 0x119   :  { %v146_v29 = vrot.slane %v136_v28, %v145_v27  ;;  %166 = vst.msk [vmem:[#allocation2] sm:$0x1] %vm45_vm0, %v136_v28  ;;  %v138_v34 = vsub.f32 %v125_v25, %v136_v28 }
 0x11b   :  { %v148_v30 = vsub.f32 %v123_v12, %v146_v29  ;;  %v149_v31 = vsub.f32 %v124_v15, %v146_v29  ;;  %v139_v35 = vmul.f32 1.442695, %v138_v34 }
 0x11d   :  { %v150_v32 = vmul.f32 1.442695, %v148_v30  ;;  %v152_v33 = vmul.f32 1.442695, %v149_v31 }
 0x11f   :  { %213 = vpow2.f32 %v150_v32 }
 0x120   :  { %215 = vpow2.f32 %v152_v33  ;;  %v170_v54 = vld [vmem:[#allocation2] sm:$0x1] }
 0x121   :  { %217 = vpow2.f32 %v139_v35 }
 0x129   :  { %v214_v36 = vpop.eup %213 }
 0x12a   :  { %v216_v37 = vpop.eup %215  ;;  %v154_v38 = vsel %vm126_vm5, %v214_v36, 0.0 }
 0x12b   :  { %v155_v39 = vsel %vm126_vm5, %v216_v37, 0.0  ;;  %v218_v45 = vpop.eup %217 }
 0x12c   :  { %v156_v40 = vadd.f32 %v155_v39, %v154_v38  ;;  %v141_v48 = vmul.f32 %v218_v45, %v137_v46 }
 0x12e   :  { %v157_v41 = vrot.slane %v156_v40, 4 }
 0x130   :  { %v158_v42 = vadd.f32 %v157_v41, %v156_v40 }
 0x132   :  { %v159_v43 = vrot.slane %v158_v42, 2 }
 0x134   :  { %v160_v44 = vadd.f32 %v159_v43, %v158_v42 }
 0x136   :  { %v161_v47 = vrot.slane %v160_v44, 1 }
 0x138   :  { %v162_v49 = vadd.f32 %v161_v47, %v160_v44 }
 0x13a   :  { %v163_v50 = vadd.f32 %v162_v49, %v141_v48 }
 0x13c   :  { %165 = vst.msk [vmem:[#allocation3] sm:$0x1] %vm45_vm0, %v163_v50 }
 0x143   :  { %v171_v51 = vld [vmem:[#allocation3] sm:$0x1] }
 0x144   :  { %219 = vlog2.f32 %v171_v51 }
 0x14e   :  { %v220_v52 = vpop.eup %219 }
 0x14f   :  { %v173_v53 = vmul.f32 0.6931472, %v220_v52 }
 0x151   :  { %v174_v55 = vadd.f32 %v173_v53, %v170_v54 }
 0x153   :  { %175 = vst.msk [vmem:[#allocation9] sm:$0x1] %vm45_vm0, %v174_v55 }
 0x154   :  { %276 = shalt.err (!%p273_p6)
}
 0x155   :  { %s277_s11 = scalar_lea.hbm %s363_s2, 16 }
 0x156   :  { %p278_p7 = scmp.ne.s32.totalorder %s363_s2, %s277_s11  ;;  %p281_p8 = scmp.lt.u32.totalorder %s277_s11, %s363_s2 }
 0x158   :  { %p283_p9 = pnand %p281_p8, %p278_p7 }
 0x15a   :  { %286 = shalt.err (!%p283_p9)
}
 0x15b   :  { %185 = dma.vmem_to_hbm [thread:$0]  %s183_s6, 16, %s363_s2, [#allocation6]  }
 0x15c   :  { %291 = dma.done.wait [#allocation6], 16  }
 0x15d   :  { %292 = vsyncadd [#allocation6], 4294967280 }
 0x15e   :  { %189 = vsyncpa [#allocation5], 1 }
 0x15f   :  { %190 = vsyncpa [#allocation8], 1 }
 0x160   :  { %191 = vsyncpa [#allocation6], 1 }

</bundles_post_ra>
